<compile_context>
chip_gen: v7x
topology: tpu7x:2x2x1
jax: 0.10.0
libtpu: 0.0.40
codegen_flags: <defaults>
</compile_context>

<pallas_src>
import functools

import jax
import jax.numpy as jnp
from jax import lax
from jax.experimental import pallas as pl
from jax.experimental.pallas import tpu as pltpu


def _round_up(x, m):
    return (x + m - 1) // m * m


def actor_kernel(obs_ref,                 # (TB, TK)
                 w1_ref, b1_ref,          # trunk Linear (W1 possibly K-tiled)
                 g_ref, beta_ref,         # LayerNorm gamma/beta (zero in pad)
                 w2_ref, b2_ref,          # policy Linear 1
                 w3_ref, b3_ref,          # policy Linear 2
                 w4_ref, b4_ref,          # policy Linear 3
                 mu_ref,                  # (TB, Ap) lane-dense output
                 x_acc,                   # (TB, Fp) f32 pre-LN accumulator
                 *, feature_dim):
    k = pl.program_id(1)
    nk = pl.num_programs(1)

    @pl.when(k == 0)
    def _():
        x_acc[...] = jnp.zeros_like(x_acc)

    # Trunk matmul partial sum: activations cast to the weight dtype so bf16
    # weights hit the native bf16xbf16->f32 MXU path; accumulation is f32.
    obs = obs_ref[...].astype(w1_ref.dtype)
    x_acc[...] += jnp.dot(obs, w1_ref[...], preferred_element_type=jnp.float32)

    @pl.when(k == nk - 1)
    def _():
        # ---- LayerNorm over the TRUE feature_dim, then Tanh ----
        x = x_acc[...] + b1_ref[...]
        fp = x.shape[-1]
        pad = fp - feature_dim
        inv_f = 1.0 / feature_dim
        # Padded columns of x are exactly zero (W1 pad cols / b1 pad are 0),
        # so sum(x) over all fp columns equals the sum over true features,
        # and each padded column contributes mean^2 to sum((x-mean)^2).
        mean = jnp.sum(x, axis=-1, keepdims=True) * inv_f
        xc = x - mean
        ss = jnp.sum(xc * xc, axis=-1, keepdims=True)
        if pad:                                   # static python branch
            ss = ss - pad * (mean * mean)
        var = ss * inv_f
        xn = xc * lax.rsqrt(var + 1e-5)
        # gamma/beta are zero in the padded columns -> h is exactly 0 there,
        # so zero-padded W2 rows keep everything downstream exact.
        h = jnp.tanh(xn * g_ref[...] + beta_ref[...])

        # ---- policy: Linear -> ReLU -> Linear -> ReLU -> Linear -> Tanh ----
        z = jnp.dot(h.astype(w2_ref.dtype), w2_ref[...],
                    preferred_element_type=jnp.float32) + b2_ref[...]
        z = jnp.maximum(z, 0.0)
        z = jnp.dot(z.astype(w3_ref.dtype), w3_ref[...],
                    preferred_element_type=jnp.float32) + b3_ref[...]
        z = jnp.maximum(z, 0.0)
        mu = jnp.dot(z.astype(w4_ref.dtype), w4_ref[...],
                     preferred_element_type=jnp.float32) + b4_ref[...]
        mu_ref[...] = jnp.tanh(mu).astype(mu_ref.dtype)


def prepare_params(params, weight_dtype=jnp.bfloat16):
    """Zero-pad feature/hidden/action dims to multiples of 128.

    The repr (row) dim of W1 is kept at its true size; the wrapper pads it only
    if K-tiling over repr_dim is triggered. Zero-padding is exact for all
    Linear layers; the kernel fixes the LayerNorm divisor to the true
    feature_dim. bf16 weights are the default (native MXU fast path, half the
    weight DMA); accumulation stays f32 in-kernel."""
    R, F = params["w1"].shape
    H = params["w2"].shape[1]
    A = params["w4"].shape[1]
    Fp, Hp, Ap = (_round_up(d, 128) for d in (F, H, A))

    def pad2(m, r, c, dtype=jnp.float32):
        return jnp.pad(m, ((0, r - m.shape[0]), (0, c - m.shape[1]))).astype(dtype)

    padded = dict(
        w1=pad2(params["w1"], R, Fp, weight_dtype),   # rows kept at true R
        b1=pad2(params["b1"], 1, Fp),
        gamma=pad2(params["gamma"], 1, Fp),            # zeros in the pad region
        beta=pad2(params["beta"], 1, Fp),
        w2=pad2(params["w2"], Fp, Hp, weight_dtype),
        b2=pad2(params["b2"], 1, Hp),
        w3=pad2(params["w3"], Hp, Hp, weight_dtype),
        b3=pad2(params["b3"], 1, Hp),
        w4=pad2(params["w4"], Hp, Ap, weight_dtype),
        b4=pad2(params["b4"], 1, Ap),
    )
    dims = dict(repr_dim=R, feature_dim=F, hidden_dim=H, action_dim=A,
                Fp=Fp, Hp=Hp, Ap=Ap)
    return padded, dims


def actor_forward(obs, std, padded_params, dims, *, block_b=256,
                  vmem_budget=48 << 20, out_dtype=jnp.float32):
    """obs: (B, repr_dim) f32, std: python/np float scalar. Returns (mu, std)."""
    p = padded_params
    B, R = obs.shape
    F, A = dims["feature_dim"], dims["action_dim"]
    Fp, Hp, Ap = dims["Fp"], dims["Hp"], dims["Ap"]
    wbytes = p["w1"].dtype.itemsize
    obytes = jnp.dtype(out_dtype).itemsize

    # ---- batch tiling: >=2 grid steps whenever B > 8 (lets the "parallel"
    # axis shard across v7x's 2 TCs and pipelines the obs DMA); TB capped at
    # block_b (default 256) to keep the MXU M-pipeline full for large B.
    if B <= 8:
        TB = _round_up(max(B, 8), 8)
    else:
        TB = min(block_b, _round_up(pl.cdiv(B, 2), 8))
    Bp = _round_up(B, TB)
    nb = Bp // TB

    def working_set(tk, k_tiled):
        w1b = tk * Fp * wbytes * (2 if k_tiled else 1)       # 2-buf only if tiled
        w_rest = (Fp * Hp + Hp * Hp + Hp * Ap) * wbytes      # single-buffered
        vecs = (3 * Fp + 2 * Hp + Ap) * 4
        obs_t = TB * tk * 4 * 2                               # double-buffered
        out_t = TB * Ap * obytes * 2
        scratch = TB * Fp * 4                                 # x accumulator
        interm = TB * (Fp + 2 * Hp + Ap) * 4                  # LN/policy temps
        return w1b + w_rest + vecs + obs_t + out_t + scratch + interm

    # ---- decide whether W1 must be K-tiled over repr_dim (v7x: 64 MiB VMEM).
    if working_set(R, False) <= vmem_budget:
        k_tiled, TK, nk = False, R, 1
        w1 = p["w1"]
        obs_in = obs if Bp == B else jnp.pad(obs, ((0, Bp - B), (0, 0)))
    else:
        k_tiled = True
        TK = _round_up(R, 128)
        while TK > 128 and working_set(TK, True) > vmem_budget:
            TK = _round_up(max(TK // 2, 128), 128)
        Rk = _round_up(R, TK)
        nk = Rk // TK
        w1 = jnp.pad(p["w1"], ((0, Rk - p["w1"].shape[0]), (0, 0)))
        obs_in = jnp.pad(obs, ((0, Bp - B), (0, Rk - R)))

    grid = (nb, nk)
    const1 = dict(pipeline_mode=pl.Buffered(1))   # constant blocks: single buffer
    w1_kwargs = {} if k_tiled else const1

    in_specs = [
        pl.BlockSpec((TB, TK), lambda i, k: (i, k)),                 # obs
        pl.BlockSpec((TK, Fp), lambda i, k: (k, 0), **w1_kwargs),    # w1
        pl.BlockSpec((1, Fp), lambda i, k: (0, 0), **const1),        # b1
        pl.BlockSpec((1, Fp), lambda i, k: (0, 0), **const1),        # gamma
        pl.BlockSpec((1, Fp), lambda i, k: (0, 0), **const1),        # beta
        pl.BlockSpec((Fp, Hp), lambda i, k: (0, 0), **const1),       # w2
        pl.BlockSpec((1, Hp), lambda i, k: (0, 0), **const1),        # b2
        pl.BlockSpec((Hp, Hp), lambda i, k: (0, 0), **const1),       # w3
        pl.BlockSpec((1, Hp), lambda i, k: (0, 0), **const1),        # b3
        pl.BlockSpec((Hp, Ap), lambda i, k: (0, 0), **const1),       # w4
        pl.BlockSpec((1, Ap), lambda i, k: (0, 0), **const1),        # b4
    ]

    cost = pl.CostEstimate(
        flops=int(2 * Bp * (TK * nk * Fp + Fp * Hp + Hp * Hp + Hp * Ap)),
        transcendentals=int(Bp * (Fp + Ap + 1)),          # tanh x2 + rsqrt
        bytes_accessed=int(Bp * TK * nk * 4
                           + (TK * nk * Fp + Fp * Hp + Hp * Hp + Hp * Ap) * wbytes
                           + (3 * Fp + 2 * Hp + Ap) * 4
                           + Bp * Ap * obytes),
    )

    # NOTE(vmem): default scoped VMEM is only ~16 MiB on v5e (32 MiB v6e/v7x),
    # so always pass an explicit limit derived from the working set.
    vmem_limit = int(max(working_set(TK, k_tiled), 32 << 20))

    kernel = functools.partial(actor_kernel, feature_dim=F)
    mu_p = pl.pallas_call(
        kernel,
        out_shape=jax.ShapeDtypeStruct((Bp, Ap), out_dtype),
        grid=grid,
        in_specs=in_specs,
        out_specs=pl.BlockSpec((TB, Ap), lambda i, k: (i, 0)),
        scratch_shapes=[pltpu.VMEM((TB, Fp), jnp.float32)],
        compiler_params=pltpu.CompilerParams(
            dimension_semantics=("parallel", "arbitrary"),
            vmem_limit_bytes=vmem_limit),
        cost_estimate=cost,
    )(obs_in, w1, p["b1"], p["gamma"], p["beta"],
      p["w2"], p["b2"], p["w3"], p["b3"], p["w4"], p["b4"])

    mu = mu_p[:B, :A]
    # std is a constant — build it outside the kernel (no HBM writeback inside).
    std_arr = jnp.full((B, A), std, jnp.float32)
    return mu, std_arr


def init_params(key, repr_dim, feature_dim, hidden_dim, action_dim):
    ks = jax.random.split(key, 4)

    def lin(k, fan_in, fan_out):
        # deterministic small-scale init (stand-in for utils.weight_init)
        w = jax.random.normal(k, (fan_in, fan_out), jnp.float32) / jnp.sqrt(fan_in)
        b = jnp.zeros((1, fan_out), jnp.float32)
        return w, b

    w1, b1 = lin(ks[0], repr_dim, feature_dim)
    w2, b2 = lin(ks[1], feature_dim, hidden_dim)
    w3, b3 = lin(ks[2], hidden_dim, hidden_dim)
    w4, b4 = lin(ks[3], hidden_dim, action_dim)
    return dict(
        w1=w1, b1=b1,
        gamma=jnp.ones((1, feature_dim), jnp.float32),
        beta=jnp.zeros((1, feature_dim), jnp.float32),
        w2=w2, b2=b2, w3=w3, b3=b3, w4=w4, b4=b4,
    )


def actor_ref(obs, std, p):
    x = obs @ p["w1"] + p["b1"]
    mean = x.mean(-1, keepdims=True)
    var = ((x - mean) ** 2).mean(-1, keepdims=True)
    h = jnp.tanh((x - mean) / jnp.sqrt(var + 1e-5) * p["gamma"] + p["beta"])
    z = jnp.maximum(h @ p["w2"] + p["b2"], 0.0)
    z = jnp.maximum(z @ p["w3"] + p["b3"], 0.0)
    mu = jnp.tanh(z @ p["w4"] + p["b4"])
    return mu, jnp.ones_like(mu) * std


if __name__ == "__main__":
    key = jax.random.PRNGKey(0)
    k_obs, k_par, k_obs2, k_par2 = jax.random.split(key, 4)
    std = 0.2

    # ---- config 1: small shapes; bf16 weights (default) + f32 tight check ----
    B, repr_dim, feature_dim, hidden_dim, action_dim = 16, 64, 32, 32, 6
    obs = jax.random.normal(k_obs, (B, repr_dim), jnp.float32)
    params = init_params(k_par, repr_dim, feature_dim, hidden_dim, action_dim)
    mu_ref, std_ref = actor_ref(obs, std, params)

    pp_bf16, dims = prepare_params(params)                       # bf16 default
    mu, std_out = actor_forward(obs, std, pp_bf16, dims)
    jax.block_until_ready((mu, std_out))
    assert mu.shape == (B, action_dim) and std_out.shape == (B, action_dim)
    assert jnp.allclose(mu, mu_ref, atol=5e-2), "mu mismatch (bf16 weights)"
    assert jnp.allclose(std_out, std_ref, atol=1e-6), "std mismatch"

    pp_f32, dims_f32 = prepare_params(params, weight_dtype=jnp.float32)
    mu32, _ = actor_forward(obs, std, pp_f32, dims_f32)
    jax.block_until_ready(mu32)
    assert jnp.allclose(mu32, mu_ref, atol=1e-4), "mu mismatch (f32 weights)"

    # ---- config 2: larger repr_dim; force K-tiling of W1 (tiny VMEM budget) ----
    B2, R2, F2, H2, A2 = 24, 320, 40, 64, 6
    obs2 = jax.random.normal(k_obs2, (B2, R2), jnp.float32)
    params2 = init_params(k_par2, R2, F2, H2, A2)
    pp2, dims2 = prepare_params(params2, weight_dtype=jnp.float32)
    mu2, _ = actor_forward(obs2, std, pp2, dims2, vmem_budget=64 * 1024)
    jax.block_until_ready(mu2)
    mu2_ref, _ = actor_ref(obs2, std, params2)
    assert mu2.shape == (B2, A2)
    assert jnp.allclose(mu2, mu2_ref, atol=1e-4), "mu mismatch (K-tiled path)"

    print("KERNEL_OK")
</pallas_src>

<mosaic_0001>
module attributes {stable_mosaic.version = 11 : i64} {
  func.func @actor_kernel(%arg0: i32, %arg1: i32, %arg2: memref<8x64xf32, #tpu.memory_space<vmem>>, %arg3: memref<64x128xbf16, #tpu.memory_space<vmem>>, %arg4: memref<1x128xf32, #tpu.memory_space<vmem>>, %arg5: memref<1x128xf32, #tpu.memory_space<vmem>>, %arg6: memref<1x128xf32, #tpu.memory_space<vmem>>, %arg7: memref<128x128xbf16, #tpu.memory_space<vmem>>, %arg8: memref<1x128xf32, #tpu.memory_space<vmem>>, %arg9: memref<128x128xbf16, #tpu.memory_space<vmem>>, %arg10: memref<1x128xf32, #tpu.memory_space<vmem>>, %arg11: memref<128x128xbf16, #tpu.memory_space<vmem>>, %arg12: memref<1x128xf32, #tpu.memory_space<vmem>>, %arg13: memref<8x128xf32, #tpu.memory_space<vmem>>, %arg14: memref<8x128xf32, #tpu.memory_space<vmem>>) attributes {dimension_semantics = [#tpu.dimension_semantics<parallel>, #tpu.dimension_semantics<arbitrary>], iteration_bounds = array<i64: 2, 1>, scalar_prefetch = 0 : i64, scratch_operands = 1 : i64, tpu.core_type = #tpu.core_type<tc>, window_params = [{transform_indices = @transform_0, window_bounds = array<i64: 8, 64>}, {pipeline_mode = #tpu.pipeline_mode<synchronous>, transform_indices = @transform_1, window_bounds = array<i64: 64, 128>}, {pipeline_mode = #tpu.pipeline_mode<synchronous>, transform_indices = @transform_2, window_bounds = array<i64: 1, 128>}, {pipeline_mode = #tpu.pipeline_mode<synchronous>, transform_indices = @transform_3, window_bounds = array<i64: 1, 128>}, {pipeline_mode = #tpu.pipeline_mode<synchronous>, transform_indices = @transform_4, window_bounds = array<i64: 1, 128>}, {pipeline_mode = #tpu.pipeline_mode<synchronous>, transform_indices = @transform_5, window_bounds = array<i64: 128, 128>}, {pipeline_mode = #tpu.pipeline_mode<synchronous>, transform_indices = @transform_6, window_bounds = array<i64: 1, 128>}, {pipeline_mode = #tpu.pipeline_mode<synchronous>, transform_indices = @transform_7, window_bounds = array<i64: 128, 128>}, {pipeline_mode = #tpu.pipeline_mode<synchronous>, transform_indices = @transform_8, window_bounds = array<i64: 1, 128>}, {pipeline_mode = #tpu.pipeline_mode<synchronous>, transform_indices = @transform_9, window_bounds = array<i64: 128, 128>}, {pipeline_mode = #tpu.pipeline_mode<synchronous>, transform_indices = @transform_10, window_bounds = array<i64: 1, 128>}, {transform_indices = @transform_11, window_bounds = array<i64: 8, 128>}]} {
    %c0_i32 = arith.constant 0 : i32
    %0 = arith.cmpi eq, %arg1, %c0_i32 : i32
    %1 = arith.extui %0 : i1 to i32
    %c0_i32_0 = arith.constant 0 : i32
    %2 = arith.cmpi ne, %1, %c0_i32_0 : i32
    scf.if %2 {
      %cst_10 = arith.constant 0.000000e+00 : f32
      %13 = vector.broadcast %cst_10 : f32 to vector<8x128xf32>
      %c0_11 = arith.constant 0 : index
      %c0_12 = arith.constant 0 : index
      %14 = vector.load %arg14[%c0_11, %c0_12] : memref<8x128xf32, #tpu.memory_space<vmem>>, vector<8x128xf32>
      tpu.vector_store %arg14[%c0_11, %c0_12], %13 {strides = array<i32>} : memref<8x128xf32, #tpu.memory_space<vmem>>, vector<8x128xf32>,
    } else {
    }
    %c0 = arith.constant 0 : index
    %c0_1 = arith.constant 0 : index
    %3 = vector.load %arg2[%c0, %c0_1] : memref<8x64xf32, #tpu.memory_space<vmem>>, vector<8x64xf32>
    %4 = arith.truncf %3 : vector<8x64xf32> to vector<8x64xbf16>
    %c0_2 = arith.constant 0 : index
    %c0_3 = arith.constant 0 : index
    %5 = vector.load %arg14[%c0_2, %c0_3] : memref<8x128xf32, #tpu.memory_space<vmem>>, vector<8x128xf32>
    %c0_4 = arith.constant 0 : index
    %c0_5 = arith.constant 0 : index
    %6 = vector.load %arg3[%c0_4, %c0_5] : memref<64x128xbf16, #tpu.memory_space<vmem>>, vector<64x128xbf16>
    %cst = arith.constant dense<0.000000e+00> : vector<8x128xf32>
    %7 = tpu.matmul %4, %6, %cst {dimension_numbers = #tpu.dot_dimension_numbers<[1], [0], [0], [1], [0, 0, 1, 1], [], []>} : vector<8x64xbf16>, vector<64x128xbf16>, vector<8x128xf32> -> vector<8x128xf32>
    %8 = arith.addf %5, %7 : vector<8x128xf32>
    %c0_6 = arith.constant 0 : index
    %c0_7 = arith.constant 0 : index
    %9 = vector.load %arg14[%c0_6, %c0_7] : memref<8x128xf32, #tpu.memory_space<vmem>>, vector<8x128xf32>
    tpu.vector_store %arg14[%c0_6, %c0_7], %8 {strides = array<i32>} : memref<8x128xf32, #tpu.memory_space<vmem>>, vector<8x128xf32>,
    %c0_i32_8 = arith.constant 0 : i32
    %10 = arith.cmpi eq, %arg1, %c0_i32_8 : i32
    %11 = arith.extui %10 : i1 to i32
    %c0_i32_9 = arith.constant 0 : i32
    %12 = arith.cmpi ne, %11, %c0_i32_9 : i32
    scf.if %12 {
      %c0_10 = arith.constant 0 : index
      %c0_11 = arith.constant 0 : index
      %13 = vector.load %arg14[%c0_10, %c0_11] : memref<8x128xf32, #tpu.memory_space<vmem>>, vector<8x128xf32>
      %c0_12 = arith.constant 0 : index
      %c0_13 = arith.constant 0 : index
      %14 = vector.load %arg4[%c0_12, %c0_13] : memref<1x128xf32, #tpu.memory_space<vmem>>, vector<1x128xf32>
      %15 = vector.broadcast %14 : vector<1x128xf32> to vector<8x128xf32>
      %16 = arith.addf %13, %15 : vector<8x128xf32>
      %cst_14 = arith.constant dense<0.000000e+00> : vector<8xf32>
      %17 = vector.multi_reduction <add>, %16, %cst_14 [1] : vector<8x128xf32> to vector<8xf32>
      %18 = vector.shape_cast %17 : vector<8xf32> to vector<8x1xf32>
      %cst_15 = arith.constant 3.125000e-02 : f32
      %19 = vector.broadcast %cst_15 : f32 to vector<8x1xf32>
      %20 = arith.mulf %18, %19 : vector<8x1xf32>
      %21 = vector.broadcast %20 : vector<8x1xf32> to vector<8x128xf32>
      %22 = arith.subf %16, %21 : vector<8x128xf32>
      %23 = arith.mulf %22, %22 : vector<8x128xf32>
      %cst_16 = arith.constant dense<0.000000e+00> : vector<8xf32>
      %24 = vector.multi_reduction <add>, %23, %cst_16 [1] : vector<8x128xf32> to vector<8xf32>
      %25 = vector.shape_cast %24 : vector<8xf32> to vector<8x1xf32>
      %26 = arith.mulf %20, %20 : vector<8x1xf32>
      %cst_17 = arith.constant 9.600000e+01 : f32
      %27 = vector.broadcast %cst_17 : f32 to vector<8x1xf32>
      %28 = arith.mulf %27, %26 : vector<8x1xf32>
      %29 = arith.subf %25, %28 : vector<8x1xf32>
      %cst_18 = arith.constant 3.125000e-02 : f32
      %30 = vector.broadcast %cst_18 : f32 to vector<8x1xf32>
      %31 = arith.mulf %29, %30 : vector<8x1xf32>
      %cst_19 = arith.constant 9.99999974E-6 : f32
      %32 = vector.broadcast %cst_19 : f32 to vector<8x1xf32>
      %33 = arith.addf %31, %32 : vector<8x1xf32>
      %34 = math.rsqrt %33 : vector<8x1xf32>
      %35 = vector.broadcast %34 : vector<8x1xf32> to vector<8x128xf32>
      %36 = arith.mulf %22, %35 : vector<8x128xf32>
      %c0_20 = arith.constant 0 : index
      %c0_21 = arith.constant 0 : index
      %37 = vector.load %arg5[%c0_20, %c0_21] : memref<1x128xf32, #tpu.memory_space<vmem>>, vector<1x128xf32>
      %38 = vector.broadcast %37 : vector<1x128xf32> to vector<8x128xf32>
      %39 = arith.mulf %36, %38 : vector<8x128xf32>
      %c0_22 = arith.constant 0 : index
      %c0_23 = arith.constant 0 : index
      %40 = vector.load %arg6[%c0_22, %c0_23] : memref<1x128xf32, #tpu.memory_space<vmem>>, vector<1x128xf32>
      %41 = vector.broadcast %40 : vector<1x128xf32> to vector<8x128xf32>
      %42 = arith.addf %39, %41 : vector<8x128xf32>
      %43 = math.tanh %42 : vector<8x128xf32>
      %44 = arith.truncf %43 : vector<8x128xf32> to vector<8x128xbf16>
      %c0_24 = arith.constant 0 : index
      %c0_25 = arith.constant 0 : index
      %45 = vector.load %arg7[%c0_24, %c0_25] : memref<128x128xbf16, #tpu.memory_space<vmem>>, vector<128x128xbf16>
      %cst_26 = arith.constant dense<0.000000e+00> : vector<8x128xf32>
      %46 = tpu.matmul %44, %45, %cst_26 {dimension_numbers = #tpu.dot_dimension_numbers<[1], [0], [0], [1], [0, 0, 1, 1], [], []>} : vector<8x128xbf16>, vector<128x128xbf16>, vector<8x128xf32> -> vector<8x128xf32>
      %c0_27 = arith.constant 0 : index
      %c0_28 = arith.constant 0 : index
      %47 = vector.load %arg8[%c0_27, %c0_28] : memref<1x128xf32, #tpu.memory_space<vmem>>, vector<1x128xf32>
      %48 = vector.broadcast %47 : vector<1x128xf32> to vector<8x128xf32>
      %49 = arith.addf %46, %48 : vector<8x128xf32>
      %cst_29 = arith.constant 0.000000e+00 : f32
      %50 = vector.broadcast %cst_29 : f32 to vector<8x128xf32>
      %51 = arith.maximumf %49, %50 : vector<8x128xf32>
      %52 = arith.truncf %51 : vector<8x128xf32> to vector<8x128xbf16>
      %c0_30 = arith.constant 0 : index
      %c0_31 = arith.constant 0 : index
      %53 = vector.load %arg9[%c0_30, %c0_31] : memref<128x128xbf16, #tpu.memory_space<vmem>>, vector<128x128xbf16>
      %cst_32 = arith.constant dense<0.000000e+00> : vector<8x128xf32>
      %54 = tpu.matmul %52, %53, %cst_32 {dimension_numbers = #tpu.dot_dimension_numbers<[1], [0], [0], [1], [0, 0, 1, 1], [], []>} : vector<8x128xbf16>, vector<128x128xbf16>, vector<8x128xf32> -> vector<8x128xf32>
      %c0_33 = arith.constant 0 : index
      %c0_34 = arith.constant 0 : index
      %55 = vector.load %arg10[%c0_33, %c0_34] : memref<1x128xf32, #tpu.memory_space<vmem>>, vector<1x128xf32>
      %56 = vector.broadcast %55 : vector<1x128xf32> to vector<8x128xf32>
      %57 = arith.addf %54, %56 : vector<8x128xf32>
      %cst_35 = arith.constant 0.000000e+00 : f32
      %58 = vector.broadcast %cst_35 : f32 to vector<8x128xf32>
      %59 = arith.maximumf %57, %58 : vector<8x128xf32>
      %60 = arith.truncf %59 : vector<8x128xf32> to vector<8x128xbf16>
      %c0_36 = arith.constant 0 : index
      %c0_37 = arith.constant 0 : index
      %61 = vector.load %arg11[%c0_36, %c0_37] : memref<128x128xbf16, #tpu.memory_space<vmem>>, vector<128x128xbf16>
      %cst_38 = arith.constant dense<0.000000e+00> : vector<8x128xf32>
      %62 = tpu.matmul %60, %61, %cst_38 {dimension_numbers = #tpu.dot_dimension_numbers<[1], [0], [0], [1], [0, 0, 1, 1], [], []>} : vector<8x128xbf16>, vector<128x128xbf16>, vector<8x128xf32> -> vector<8x128xf32>
      %c0_39 = arith.constant 0 : index
      %c0_40 = arith.constant 0 : index
      %63 = vector.load %arg12[%c0_39, %c0_40] : memref<1x128xf32, #tpu.memory_space<vmem>>, vector<1x128xf32>
      %64 = vector.broadcast %63 : vector<1x128xf32> to vector<8x128xf32>
      %65 = arith.addf %62, %64 : vector<8x128xf32>
      %66 = math.tanh %65 : vector<8x128xf32>
      %c0_41 = arith.constant 0 : index
      %c0_42 = arith.constant 0 : index
      %67 = vector.load %arg13[%c0_41, %c0_42] : memref<8x128xf32, #tpu.memory_space<vmem>>, vector<8x128xf32>
      tpu.vector_store %arg13[%c0_41, %c0_42], %66 {strides = array<i32>} : memref<8x128xf32, #tpu.memory_space<vmem>>, vector<8x128xf32>,
    } else {
    }
    return
  }
  func.func @transform_0(%arg0: i32, %arg1: i32) -> (i32, i32) {
    %c0_i32 = arith.constant 0 : i32
    return %arg0, %arg1 : i32, i32
  }
  func.func @transform_1(%arg0: i32, %arg1: i32) -> (i32, i32) {
    %c0_i32 = arith.constant 0 : i32
    %c0_i32_0 = arith.constant 0 : i32
    return %arg1, %c0_i32 : i32, i32
  }
  func.func @transform_2(%arg0: i32, %arg1: i32) -> (i32, i32) {
    %c0_i32 = arith.constant 0 : i32
    %c0_i32_0 = arith.constant 0 : i32
    %c0_i32_1 = arith.constant 0 : i32
    return %c0_i32, %c0_i32_0 : i32, i32
  }
  func.func @transform_3(%arg0: i32, %arg1: i32) -> (i32, i32) {
    %c0_i32 = arith.constant 0 : i32
    %c0_i32_0 = arith.constant 0 : i32
    %c0_i32_1 = arith.constant 0 : i32
    return %c0_i32, %c0_i32_0 : i32, i32
  }
  func.func @transform_4(%arg0: i32, %arg1: i32) -> (i32, i32) {
    %c0_i32 = arith.constant 0 : i32
    %c0_i32_0 = arith.constant 0 : i32
    %c0_i32_1 = arith.constant 0 : i32
    return %c0_i32, %c0_i32_0 : i32, i32
  }
  func.func @transform_5(%arg0: i32, %arg1: i32) -> (i32, i32) {
    %c0_i32 = arith.constant 0 : i32
    %c0_i32_0 = arith.constant 0 : i32
    %c0_i32_1 = arith.constant 0 : i32
    return %c0_i32, %c0_i32_0 : i32, i32
  }
  func.func @transform_6(%arg0: i32, %arg1: i32) -> (i32, i32) {
    %c0_i32 = arith.constant 0 : i32
    %c0_i32_0 = arith.constant 0 : i32
    %c0_i32_1 = arith.constant 0 : i32
    return %c0_i32, %c0_i32_0 : i32, i32
  }
  func.func @transform_7(%arg0: i32, %arg1: i32) -> (i32, i32) {
    %c0_i32 = arith.constant 0 : i32
    %c0_i32_0 = arith.constant 0 : i32
    %c0_i32_1 = arith.constant 0 : i32
    return %c0_i32, %c0_i32_0 : i32, i32
  }
  func.func @transform_8(%arg0: i32, %arg1: i32) -> (i32, i32) {
    %c0_i32 = arith.constant 0 : i32
    %c0_i32_0 = arith.constant 0 : i32
    %c0_i32_1 = arith.constant 0 : i32
    return %c0_i32, %c0_i32_0 : i32, i32
  }
  func.func @transform_9(%arg0: i32, %arg1: i32) -> (i32, i32) {
    %c0_i32 = arith.constant 0 : i32
    %c0_i32_0 = arith.constant 0 : i32
    %c0_i32_1 = arith.constant 0 : i32
    return %c0_i32, %c0_i32_0 : i32, i32
  }
  func.func @transform_10(%arg0: i32, %arg1: i32) -> (i32, i32) {
    %c0_i32 = arith.constant 0 : i32
    %c0_i32_0 = arith.constant 0 : i32
    %c0_i32_1 = arith.constant 0 : i32
    return %c0_i32, %c0_i32_0 : i32, i32
  }
  func.func @transform_11(%arg0: i32, %arg1: i32) -> (i32, i32) {
    %c0_i32 = arith.constant 0 : i32
    %c0_i32_0 = arith.constant 0 : i32
    return %arg0, %c0_i32 : i32, i32
  }
}

</mosaic_0001>

<bundles_post_ra>
// kernel: tpu_custom_call.1
= control target key start
LH: loop header
LB: loop body
LE: loop exit
PB: predicated region body
PF: predicated region fallthrough
CT: control target
= control target key end

     0   :  { %s2057_s0 = inlined_call_operand.hbm [shape: f32[16,64], index: 0, kind: input, shape index: {}]   ;;  %s2058_s1 = inlined_call_operand.hbm [shape: bf16[64,128], index: 1, kind: input, shape index: {}]   ;;  %s2059_s2 = inlined_call_operand.vmem [shape: f32[1,128], index: 2, kind: input, shape index: {}]   ;;  %s2060_s3 = inlined_call_operand.vmem [shape: f32[1,128], index: 3, kind: input, shape index: {}]   ;;  %s2061_s4 = inlined_call_operand.vmem [shape: f32[1,128], index: 4, kind: input, shape index: {}]   ;;  %s2062_s5 = inlined_call_operand.hbm [shape: bf16[128,128], index: 5, kind: input, shape index: {}]   ;;  %s2063_s6 = inlined_call_operand.vmem [shape: f32[1,128], index: 6, kind: input, shape index: {}]   ;;  %s2064_s7 = inlined_call_operand.hbm [shape: bf16[128,128], index: 7, kind: input, shape index: {}]   ;;  %s2065_s8 = inlined_call_operand.vmem [shape: f32[1,128], index: 8, kind: input, shape index: {}]   ;;  %s2066_s9 = inlined_call_operand.hbm [shape: bf16[128,128], index: 9, kind: input, shape index: {}]   ;;  %s2067_s10 = inlined_call_operand.vmem [shape: f32[1,128], index: 10, kind: input, shape index: {}]   ;;  %s2068_s11 = inlined_call_operand.hbm [shape: f32[16,128], index: 11, kind: output, shape index: {}]  }
   0x1   :  { %2075 = sst [smem:[#allocation18_spill]] %s2058_s1 }
   0x2   :  { %2076 = sst [smem:[#allocation19_spill]] %s2063_s6 }
   0x3   :  { %2077 = sst [smem:[#allocation20_spill]] %s2065_s8 }
   0x4   :  { %2078 = sst [smem:[#allocation21_spill]] %s2067_s10 }
   0x5   :  { %2079 = sst [smem:[#allocation22_spill]] %s2068_s11 }
   0x6   :  { %16 = vsyncpa [#allocation4], 0 }
   0x7   :  { %18 = vsyncpa [#allocation4 + $0x1], 0 }
   0x8   :  { %19 = vsyncpa [#allocation7], 0 }
   0x9   :  { %20 = vsyncpa [#allocation10], 0 }
   0xa   :  { %21 = vsyncpa [#allocation5], 0 }
   0xb   :  { %23 = vsyncpa [#allocation5 + $0x1], 0  ;;  %s1692_s17 = smov 0   ;;  %s1694_s18 = smov 0  }
   0xc   :  { %s1696_s19 = smov 0   ;;  %s1698_s20 = smov 0  }
   0xd   :  { %s1700_s21 = smov 0   ;;  %s1702_s22 = smov 0  }
   0xe LB: > { %2080 = sst [smem:[#allocation17_spill]] %s1612_s20  ;;  %s2069_s23 = sadd.s32 4294967295, %s1620_s22   ;;  %s1620_s22 = sphi %s1702_s22, %s29_s22   ;;  %s1616_s21 = sphi %s1700_s21, %s2107_s21   ;;  %s1612_s20 = sphi %s1698_s20, %s2106_s20   ;;  %s1608_s19 = sphi %s1696_s19, %s2105_s19   ;;  %s1604_s18 = sphi %s1694_s18, %s2104_s18   ;;  %s1600_s17 = sphi %s1692_s17, %s2103_s17  }
   0xf   : > { %p1089_p0 = scmp.ge.s32.totalorder %s1620_s22, 1  ;;  %p1726_p1 = scmp.eq.s32.totalorder %s2069_s23, 0 }
  0x10   : > { %p315_p2 = scmp.lt.s32.totalorder %s1620_s22, 3  ;;  %s1622_s26 = smov [#allocation6]  }
  0x11   : > { %s2081_s24 = scalar_select %p1726_p1, 1, 0 }
  0x12   : > { %p1731_p3 = pnand %p1089_p0, %p315_p2  ;;  %s330_s27 = sshll.u32 %s1622_s26, 4  ;;  %s1735_s27 = int_to_ptr.vmem [resolvable:$true] %s330_s27 }
  0x13   : > { %s1623_s29 = smov [#allocation9]   ;;  %s1624_s12 = smov [#allocation8]  }
  0x14   : > { %s2082_s25 = scalar_select %p1731_p3, 1, 0 }
  0x15   : > { %p1267_p4 = pneg %p1731_p3  ;;  %s368_s30 = sshll.u32 %s1623_s29, 4  ;;  %s1746_s30 = int_to_ptr.vmem [resolvable:$true] %s368_s30 }
  0x16   : > { %s1748_s13 = sshll.u32 %s1624_s12, 4  ;;  %s2084_s1 = sld [smem:[#allocation18_spill]]  ;;  %s353_s13 = int_to_ptr.vmem [resolvable:$true] %s1748_s13 }
  0x17   : > { %p1742_p6 = pnand %p1267_p4, %p1726_p1 }
  0x19   : > { %p1758_p8 = pneg %p1742_p6 }
  0x1c   : > { %s1388_s16 = scalar_lea.hbm %s2084_s1, 512 }
  0x1d   : > { %p1389_p7 = scmp.ne.s32.totalorder %s2084_s1, %s1388_s16  ;;  %p1395_p11 = scmp.lt.u32.totalorder %s1388_s16, %s2084_s1 }
  0x1f   : > { %p1391_p9 = pnand %p1758_p8, %p1389_p7 }
  0x21   : > { %p1392_p10 = pneg %p1391_p9 }
  0x23   : > { %p1397_p12 = pnand %p1395_p11, %p1392_p10 }
  0x25   : > { %1400 = shalt.err (!%p1397_p12)
}
  0x26   : > { %s1401_s23 = scalar_lea.vmem %s1735_s27, 512  ;;  %p1409_p4 = scmp.lt.s32.totalorder %s1735_s27, %s1735_s27 }
  0x27   : > { %p1402_p13 = scmp.ne.s32.totalorder %s1735_s27, %s1401_s23  ;;  %p1410_p5 = scmp.lt.s32.totalorder %s1401_s23, %s1401_s23 }
  0x29   : > { %p1404_p0 = pnand %p1402_p13, %p1758_p8  ;;  %p1411_p7 = por %p1410_p5, %p1409_p4 }
  0x2b   : > { %p1405_p2 = pneg %p1404_p0 }
  0x2d   : > { %p1412_p9 = pnand %p1411_p7, %p1405_p2 }
  0x2f   : > { %1415 = shalt.err (!%p1412_p9)
}
  0x30   : > { %s1625_s14 = smov 64   ;;  %s1626_s15 = smov 4  }
  0x31   : > { %1270 = dma.hbm_to_vmem [thread:$0]  (!%p1742_p6), %s2084_s1, 512, %s1735_s27, [#allocation7], %s1625_s14, %s1625_s14, %s1626_s15  }
  0x32   : > { %s1416_s23 = scalar_lea.hbm %s2064_s7, 1024 }
  0x33   : > { %p1417_p5 = scmp.ne.s32.totalorder %s2064_s7, %s1416_s23  ;;  %p1423_p12 = scmp.lt.u32.totalorder %s1416_s23, %s2064_s7 }
  0x35   : > { %p1419_p10 = pnand %p1417_p5, %p1758_p8 }
  0x37   : > { %p1420_p11 = pneg %p1419_p10 }
  0x39   : > { %p1425_p13 = pnand %p1423_p12, %p1420_p11 }
  0x3b   : > { %1428 = shalt.err (!%p1425_p13)
}
  0x3c   : > { %s1429_s27 = scalar_lea.vmem %s1746_s30, 1024  ;;  %p1437_p7 = scmp.lt.s32.totalorder %s1746_s30, %s1746_s30 }
  0x3d   : > { %p1430_p0 = scmp.ne.s32.totalorder %s1746_s30, %s1429_s27  ;;  %p1438_p9 = scmp.lt.s32.totalorder %s1429_s27, %s1429_s27 }
  0x3f   : > { %p1432_p2 = pnand %p1430_p0, %p1758_p8  ;;  %p1439_p5 = por %p1438_p9, %p1437_p7 }
  0x41   : > { %p1433_p4 = pneg %p1432_p2 }
  0x43   : > { %p1440_p10 = pnand %p1439_p5, %p1433_p4 }
  0x45   : > { %1443 = shalt.err (!%p1440_p10)
}
  0x46   : > { %1276 = dma.hbm_to_vmem [thread:$0]  (!%p1742_p6), %s2064_s7, 1024, %s1746_s30, [#allocation10], %s1625_s14, %s1625_s14, %s1626_s15  }
  0x47   : > { %s1444_s16 = scalar_lea.hbm %s2062_s5, 1024 }
  0x48   : > { %p1445_p11 = scmp.ne.s32.totalorder %s2062_s5, %s1444_s16  ;;  %p1451_p0 = scmp.lt.u32.totalorder %s1444_s16, %s2062_s5 }
  0x4a   : > { %p1447_p12 = pnand %p1445_p11, %p1758_p8 }
  0x4c   : > { %p1448_p13 = pneg %p1447_p12 }
  0x4e   : > { %p1453_p2 = pnand %p1451_p0, %p1448_p13 }
  0x50   : > { %1456 = shalt.err (!%p1453_p2)
}
  0x51   : > { %s1457_s27 = scalar_lea.vmem %s353_s13, 1024  ;;  %p1465_p5 = scmp.lt.s32.totalorder %s353_s13, %s353_s13 }
  0x52   : > { %p1458_p4 = scmp.ne.s32.totalorder %s353_s13, %s1457_s27  ;;  %p1466_p10 = scmp.lt.s32.totalorder %s1457_s27, %s1457_s27 }
  0x54   : > { %p1460_p7 = pnand %p1458_p4, %p1758_p8  ;;  %p1467_p3 = por %p1466_p10, %p1465_p5 }
  0x56   : > { %p1461_p9 = pneg %p1460_p7 }
  0x58   : > { %p1468_p1 = pnand %p1467_p3, %p1461_p9 }
  0x5a   : > { %1471 = shalt.err (!%p1468_p1)
}
  0x5b   : > { %1273 = dma.hbm_to_vmem [thread:$0]  (!%p1742_p6), %s2062_s5, 1024, %s353_s13, [#allocation7], %s1625_s14, %s1625_s14, %s1626_s15  }
  0x5c   : > { %s1627_s8 = smov [#allocation11]   ;;  %s1472_s26 = scalar_lea.hbm %s2066_s9, 1024 }
  0x5d   : > { %s384_s10 = sshll.u32 %s1627_s8, 4  ;;  %p1473_p1 = scmp.ne.s32.totalorder %s2066_s9, %s1472_s26  ;;  %s385_s10 = int_to_ptr.vmem [resolvable:$true] %s384_s10 }
  0x5e   : > { %p1479_p12 = scmp.lt.u32.totalorder %s1472_s26, %s2066_s9 }
  0x5f   : > { %p1475_p3 = pnand %p1473_p1, %p1758_p8 }
  0x61   : > { %p1476_p11 = pneg %p1475_p3 }
  0x63   : > { %p1481_p13 = pnand %p1479_p12, %p1476_p11 }
  0x65   : > { %1484 = shalt.err (!%p1481_p13)
}
  0x66   : > { %s1485_s13 = scalar_lea.vmem %s385_s10, 1024  ;;  %p1493_p7 = scmp.lt.s32.totalorder %s385_s10, %s385_s10 }
  0x67   : > { %p1486_p0 = scmp.ne.s32.totalorder %s385_s10, %s1485_s13  ;;  %p1494_p9 = scmp.lt.s32.totalorder %s1485_s13, %s1485_s13 }
  0x69   : > { %p1488_p2 = pnand %p1486_p0, %p1758_p8  ;;  %p1495_p5 = por %p1494_p9, %p1493_p7 }
  0x6b   : > { %p1489_p4 = pneg %p1488_p2 }
  0x6d   : > { %p1496_p10 = pnand %p1495_p5, %p1489_p4 }
  0x6f   : > { %1499 = shalt.err (!%p1496_p10)
}
  0x70   : > { %1279 = dma.hbm_to_vmem [thread:$0]  (!%p1742_p6), %s2066_s9, 1024, %s385_s10, [#allocation10], %s1625_s14, %s1625_s14, %s1626_s15  }
  0x71   : > { %s1088_s11 = sadd.s32 4294967294, %s1620_s22   ;;  %s41_s28 = sadd.s32 1, %s1616_s21 }
  0x72   : > { %p43_p8 = scmp.ge.s32.totalorder %s41_s28, 2  ;;  %s50_s8 = sadd.s32 1, %s1608_s19 }
  0x73   : > { %p57_p1 = scmp.ne.s32.totalorder %s1608_s19, %s1604_s18  ;;  %p58_p3 = scmp.eq.s32.totalorder %s1620_s22, 0 }
  0x74   : > { %s2109_s28 = smov (%p43_p8, %s41_s28), 0  ;;  %p63_p12 = scmp.ne.s32.totalorder %s1604_s18, %s1600_s17 }
  0x75   : > { %p1859_p11 = por %p58_p3, %p57_p1  ;;  %s45_s14 = ssub.s32 %s1616_s21, %s2109_s28 }
  0x76   : > { %s2087_s15 = sadd.s32 4294967295, %s1620_s22   ;;  %p48_p13 = scmp.eq.s32.totalorder %s45_s14, 0 }
  0x77   : > { %p302_p6 = scmp.eq.s32.totalorder %s2087_s15, 1  ;;  %p2088_p0 = scmp.ne.s32.totalorder %s2081_s24, 0 }
  0x78   : > { %p308_p7 = scmp.eq.s32.totalorder %s1088_s11, 1  ;;  %p1292_p5 = scmp.lt.s32.totalorder %s1620_s22, 2 }
  0x79   : > { %p1871_p2 = por %p2088_p0, %p63_p12  ;;  %p1875_p4 = por %p302_p6, %p57_p1 }
  0x7a   : > { %s1880_s26 = scalar_select %p48_p13, %s1608_s19, %s50_s8  }
  0x7b   : > { %s2090_s16 = scalar_select %p1875_p4, 1, 0 }
  0x7c   : > { %p1882_p9 = por %p308_p7, %p63_p12  ;;  %s401_s12 = sand.u32 1, %s1608_s19  }
  0x7d   : > { %s1096_s23 = sshll.u32 %s1616_s21, 7  ;;  %s1095_s27 = sshll.u32 %s401_s12, 3 }
  0x7e   : > { %s2091_s29 = scalar_select %p1882_p9, 1, 0 }
  0x7f   : > { %s1892_s6 = scalar_lea.hbm %s2057_s0, %s1096_s23  ;;  %s405_s11 = scalar_lea.vmem [#allocation3], %s1095_s27 }
  0x80   : > { %s413_s8 = sshll.u32 %s405_s11, 4  ;;  %p1896_p10 = pnand %p1292_p5, %p1859_p11  ;;  %s1900_s8 = int_to_ptr.vmem [resolvable:$true] %s413_s8 }
  0x81   : > { %s402_s15 = scalar_lea.sflag [#allocation4], %s401_s12  ;;  %s1500_s1 = scalar_lea.hbm %s1892_s6, 128 }
  0x82   : > { %p1501_p8 = scmp.ne.s32.totalorder %s1892_s6, %s1500_s1  ;;  %p1502_p1 = pneg %p1896_p10 }
  0x83   : > { %s1505_s20 = scalar_lea.hbm %s2057_s0, 256  ;;  %p1506_p11 = scmp.lt.u32.totalorder %s1892_s6, %s2057_s0 }
  0x84   : > { %p1503_p3 = pnand %p1502_p1, %p1501_p8  ;;  %p1507_p6 = scmp.lt.u32.totalorder %s1505_s20, %s1500_s1 }
  0x85   : > { %p1509_p0 = scmp.lt.u32.totalorder %s1500_s1, %s1892_s6 }
  0x86   : > { %p1504_p12 = pneg %p1503_p3  ;;  %p1508_p13 = por %p1507_p6, %p1506_p11 }
  0x88   : > { %p1510_p7 = por %p1509_p0, %p1508_p13 }
  0x8a   : > { %p1511_p5 = pnand %p1510_p7, %p1504_p12 }
  0x8c   : > { %1514 = shalt.err (!%p1511_p5)
}
  0x8d   : > { %s1515_s12 = scalar_lea.vmem %s1900_s8, 128  ;;  %s1628_s11 = smov [#allocation3]  }
  0x8e   : > { %p1516_p8 = scmp.ne.s32.totalorder %s1900_s8, %s1515_s12  ;;  %s1520_s23 = sshll.u32 %s1628_s11, 4  ;;  %s1521_s23 = int_to_ptr.vmem [resolvable:$false] %s1520_s23 }
  0x8f   : > { %s1522_s27 = scalar_lea.vmem %s1521_s23, 256  ;;  %p1523_p4 = scmp.lt.s32.totalorder %s1900_s8, %s1521_s23 }
  0x90   : > { %p1518_p3 = pnand %p1516_p8, %p1502_p1  ;;  %p1524_p11 = scmp.lt.s32.totalorder %s1522_s27, %s1515_s12 }
  0x92   : > { %p1519_p9 = pneg %p1518_p3  ;;  %p1525_p6 = por %p1524_p11, %p1523_p4 }
  0x94   : > { %p1526_p13 = pnand %p1525_p6, %p1519_p9 }
  0x96   : > { %1529 = shalt.err (!%p1526_p13)
}
  0x97   : > { %1283 = dma.hbm_to_vmem [thread:$0]  (!%p1896_p10), %s1892_s6, 128, %s1900_s8, %s402_s15  }
  0x98   : > { %p2093_p12 = scmp.ne.s32.totalorder %s2082_s25, 0 }
  0x99   : > { %s1930_s1 = sand.u32 (!%p2093_p12), 1, %s1604_s18  }
  0x9a   : > { %422 = sbr.rel (%p2093_p12) target bundleno = 1400 (0x578), region = 64  ;;  %s1098_s20 = sshll.u32 (!%p2093_p12), %s1930_s1, 3 }
  0x9b   : > { %s425_s13 = scalar_lea.sflag (!%p2093_p12), [#allocation4], %s1930_s1  ;;  %s428_s30 = scalar_lea.vmem (!%p2093_p12), [#allocation3], %s1098_s20 }
  0xa1   : > { %1583 = dma.done.wait (%p1871_p2), %s425_s13, 128  }
  0xa2   : > { %1585 = vsyncadd (%p1871_p2), %s425_s13, 4294967168  ;;  %p2094_p4 = scmp.ne.s32.totalorder %s2081_s24, 0 }
  0xa4   : > { %1587 = dma.done.wait (%p2094_p4), [#allocation7], 1536  }
  0xa5   : > { %1589 = vsyncadd (%p2094_p4), [#allocation7], 4294965760 }
  0xa6   : > { %1591 = dma.done.wait (%p2094_p4), [#allocation10], 2048  }
  0xa7   : > { %1593 = vsyncadd (%p2094_p4), [#allocation10], 4294965248  ;;  %v1629_v0 = vmov 0.0   ;;  %vm1630_vm0 = vmmov 0   ;;  %v1354_v1 = vld [vmem:[#allocation6] sm:$0xff]   ;;  %v1355_v2 = vld [vmem:[#allocation6 + $0x8] sm:$0xff]  }
  0xa8   : > { %1175 = vmatprep.subr.bf16.mxu0 %v1629_v0  ;;  %1183 = vmatprep.mubr.msk.bf16.mxu0 %vm1630_vm0, %v1629_v0  ;;  %v1356_v3 = vld [vmem:[#allocation6 + $0x10] sm:$0xff]   ;;  %vm525_vm1 = vcmask 523264   ;;  %v1357_v4 = vld [vmem:[#allocation6 + $0x18] sm:$0xff]   ;;  %v1358_v17 = vld [vmem:[#allocation8] sm:$0xff]   ;;  %s2095_s11 = sld [smem:[#allocation19_spill]]  ;;  %s2096_s13 = sld [smem:[#allocation20_spill]] }
  0xa9   : > { %1187 = vmatprep.subr.bf16.mxu1 %v1629_v0  ;;  %1203 = vmatprep.mubr.msk.bf16.mxu1 %vm1630_vm0, %v1629_v0  ;;  %v490_v5 = vld [vmem:[%s428_s30] sm:$0xff]  ;;  %v1359_v18 = vld [vmem:[#allocation8 + $0x8] sm:$0xff]   ;;  %v1362_v21 = vld [vmem:[#allocation8 + $0x20] sm:$0xff]   ;;  %s2097_s30 = sld [smem:[#allocation17_spill]]  ;;  %s2098_s10 = sld [smem:[#allocation21_spill]] }
  0xaa   : > { %1176 = vmatpush3.bf16.msra.mxu0 %v1354_v1  ;;  %v491_v6 = vpack.c.bf16 %v490_v5, %v490_v5  ;;  %v1109_v7 = vld [vmem:[%s2059_s2] ss:$0 sm:$0xff]  ;;  %1188 = vmatpush3.bf16.msra.mxu1 %v1358_v17  ;;  %v1361_v20 = vld [vmem:[#allocation8 + $0x18] sm:$0xff]   ;;  %v1363_v22 = vld [vmem:[#allocation8 + $0x28] sm:$0xff]   ;;  %s482_s8 = scalar_lea.vmem [#allocation12], %s1098_s20  ;;  %s955_s27 = scalar_lea.sflag [#allocation5], %s1930_s1 }
  0xab   : > { %1177 = vmatprep.subr.bf16.mxu0 %v1629_v0  ;;  %1189 = vmatprep.subr.bf16.mxu1 %v1629_v0  ;;  %v1360_v19 = vld [vmem:[#allocation8 + $0x10] sm:$0xff]   ;;  %v1365_v24 = vld [vmem:[#allocation8 + $0x38] sm:$0xff]   ;;  %v1366_v25 = vld [vmem:[#allocation9] sm:$0xff]   ;;  %s968_s14 = sshll.u32 %s482_s8, 4  ;;  %p2100_p9 = scmp.ne.s32.totalorder %s2090_s16, 0  ;;  %s2010_s14 = int_to_ptr.vmem [resolvable:$true] %s968_s14 }
  0xac   : > { %v1364_v23 = vld [vmem:[#allocation8 + $0x30] sm:$0xff]   ;;  %v1367_v26 = vld [vmem:[#allocation9 + $0x8] sm:$0xff]   ;;  %v1369_v28 = vld [vmem:[#allocation9 + $0x18] sm:$0xff]   ;;  %s1631_s20 = smov [#allocation12]  }
  0xad   : > { %v1368_v27 = vld [vmem:[#allocation9 + $0x10] sm:$0xff]   ;;  %v1370_v29 = vld [vmem:[#allocation9 + $0x20] sm:$0xff]   ;;  %v1371_v30 = vld [vmem:[#allocation9 + $0x28] sm:$0xff]  }
  0xae   : > { %1178 = vmatpush3.bf16.msra.mxu0 %v1355_v2  ;;  %1190 = vmatpush3.bf16.msra.mxu1 %v1359_v18  ;;  %v1110_v38 = vld [vmem:[%s2060_s3] ss:$0 sm:$0xff]  ;;  %v1373_v46 = vld [vmem:[#allocation9 + $0x38] sm:$0xff]   ;;  %v1374_v47 = vld [vmem:[#allocation11] sm:$0xff]  }
  0xaf   : > { %1179 = vmatprep.subr.bf16.mxu0 %v1629_v0  ;;  %1191 = vmatprep.subr.bf16.mxu1 %v1629_v0  ;;  %v1111_v40 = vld [vmem:[%s2061_s4] ss:$0 sm:$0xff]  ;;  %v1375_v48 = vld [vmem:[#allocation11 + $0x8] sm:$0xff]   ;;  %v1377_v50 = vld [vmem:[#allocation11 + $0x18] sm:$0xff]   ;;  %s1140_s6 = sshll.u32 %s2097_s30, 7  ;;  %s1534_s30 = sshll.u32 %s1631_s20, 4  ;;  %s1535_s30 = int_to_ptr.vmem [resolvable:$false] %s1534_s30 }
  0xb0   : > { %v1372_v45 = vld [vmem:[#allocation9 + $0x30] sm:$0xff]   ;;  %v1378_v51 = vld [vmem:[#allocation11 + $0x20] sm:$0xff]   ;;  %v1379_v52 = vld [vmem:[#allocation11 + $0x28] sm:$0xff]   ;;  %s1536_s24 = scalar_lea.vmem %s1535_s30, 256  ;;  %p1537_p0 = scmp.lt.s32.totalorder %s2010_s14, %s1535_s30 }
  0xb1   : > { %v1376_v49 = vld [vmem:[#allocation11 + $0x10] sm:$0xff]   ;;  %v1381_v62 = vld [vmem:[#allocation11 + $0x38] sm:$0xff]  }
  0xb2   : > { %1180 = vmatpush3.bf16.msra.mxu0 %v1356_v3  ;;  %1192 = vmatpush3.bf16.msra.mxu1 %v1360_v19  ;;  %v1112_v53 = vld [vmem:[%s2095_s11] ss:$0 sm:$0xff]  ;;  %s2099_s11 = sld [smem:[#allocation22_spill]] }
  0xb3   : > { %1181 = vmatprep.subr.bf16.mxu0 %v1629_v0  ;;  %1193 = vmatprep.subr.bf16.mxu1 %v1629_v0  ;;  %v1380_v61 = vld [vmem:[#allocation11 + $0x30] sm:$0xff]  }
  0xb4   : > { %v1121_v63 = vld [vmem:[%s2096_s13] ss:$0 sm:$0xff]  ;;  %s1530_s13 = scalar_lea.vmem %s2010_s14, 128 }
  0xb5   : > { %p1531_p2 = scmp.ne.s32.totalorder %s2010_s14, %s1530_s13  ;;  %p1538_p7 = scmp.lt.s32.totalorder %s1536_s24, %s1530_s13 }
  0xb6   : > { %1182 = vmatpush3.bf16.msra.mxu0 %v1357_v4  ;;  %1194 = vmatpush3.bf16.msra.mxu1 %v1361_v20 }
  0xb7   : > { %1207 = vmatprep.subr.bf16.mxu0 %v1629_v0  ;;  %1195 = vmatprep.subr.bf16.mxu1 %v1629_v0  ;;  %p1532_p10 = pnand %p1531_p2, %p2100_p9  ;;  %p1539_p5 = por %p1538_p7, %p1537_p0 }
  0xb8   : > { %s2008_s23 = scalar_lea.hbm %s2099_s11, %s1140_s6 }
  0xb9   : > { %1184 = vmatmul.mubr.msk.bf16.vlgmr.msra.gmra.mrb[0].mxu0 %vm525_vm1, %v491_v6  ;;  %p1533_p1 = pneg %p1532_p10 }
  0xba   : > { %1223 = vmatprep.mubr.msk.bf16.mxu0 %vm1630_vm0, %v1629_v0  ;;  %1196 = vmatpush3.bf16.msra.mxu1 %v1362_v21 }
  0xbb   : > { %1197 = vmatprep.subr.bf16.mxu1 %v1629_v0  ;;  %1208 = vmatpush3.bf16.msra.mxu0 %v1366_v25  ;;  %p1540_p8 = pnand %p1539_p5, %p1533_p1 }
  0xbc   : > { %1209 = vmatprep.subr.bf16.mxu0 %v1629_v0 }
  0xbe   : > { %1198 = vmatpush3.bf16.msra.mxu1 %v1363_v22 }
  0xbf   : > { %1199 = vmatprep.subr.bf16.mxu1 %v1629_v0  ;;  %1210 = vmatpush3.bf16.msra.mxu0 %v1367_v26 }
  0xc0   : > { %1211 = vmatprep.subr.bf16.mxu0 %v1629_v0 }
  0xc2   : > { %1200 = vmatpush3.bf16.msra.mxu1 %v1364_v23 }
  0xc3   : > { %1201 = vmatprep.subr.bf16.mxu1 %v1629_v0  ;;  %1212 = vmatpush3.bf16.msra.mxu0 %v1368_v27 }
  0xc4   : > { %1213 = vmatprep.subr.bf16.mxu0 %v1629_v0 }
  0xc6   : > { %1202 = vmatpush3.bf16.msra.mxu1 %v1365_v24 }
  0xc7   : > { %1227 = vmatprep.subr.bf16.mxu1 %v1629_v0  ;;  %1214 = vmatpush3.bf16.msra.mxu0 %v1369_v28 }
  0xc8   : > { %1215 = vmatprep.subr.bf16.mxu0 %v1629_v0 }
  0xcb   : > { %1216 = vmatpush3.bf16.msra.mxu0 %v1370_v29 }
  0xcc   : > { %1217 = vmatprep.subr.bf16.mxu0 %v1629_v0 }
  0xcf   : > { %1218 = vmatpush3.bf16.msra.mxu0 %v1371_v30 }
  0xd0   : > { %1219 = vmatprep.subr.bf16.mxu0 %v1629_v0 }
  0xd3   : > { %1220 = vmatpush3.bf16.msra.mxu0 %v1372_v45 }
  0xd4   : > { %1221 = vmatprep.subr.bf16.mxu0 %v1629_v0 }
  0xd7   : > { %1222 = vmatpush3.bf16.msra.mxu0 %v1373_v46 }
 0x18c   : > { %v563_v8 = vpop.f32.mrb[0].mxu0 }
 0x18d   : > { %v582_v9 = vadd.f32 %v1109_v7, %v563_v8  ;;  %v1185_v10 = vpop.f32.mrb[1].mxu0 }
 0x18e   : > { %v566_v11 = vpop.f32.mrb[2].mxu0 }
 0x18f   : > { %583 = vadd.xlane.f32.xlu0 %v582_v9  ;;  %v1186_v12 = vpop.f32.mrb[3].mxu0 }
 0x21c   : > { %v584_v13 = vpop.xlane.xlu0 %583 }
 0x21d   : > { %v585_v14 = vmul.f32 0.03125, %v584_v13 }
 0x21f   : > { %v586_v15 = vsub.f32 %v582_v9, %v585_v14  ;;  %v590_v31 = vmul.f32 %v585_v14, %v585_v14 }
 0x221   : > { %v587_v16 = vmul.f32 %v586_v15, %v586_v15  ;;  %v591_v32 = vmul.f32 96.0, %v590_v31 }
 0x223   : > { %588 = vadd.xlane.f32.xlu0 %v587_v16 }
 0x2b0   : > { %v589_v33 = vpop.xlane.xlu0 %588 }
 0x2b1   : > { %v592_v34 = vsub.f32 %v589_v33, %v591_v32 }
 0x2b3   : > { %v593_v35 = vmul.f32 0.03125, %v592_v34 }
 0x2b5   : > { %v594_v36 = vadd.f32 1e-05, %v593_v35 }
 0x2b7   : > { %1382 = vrsqrt.f32 %v594_v36 }
 0x2c1   : > { %v1383_v37 = vpop.eup %1382 }
 0x2c2   : > { %v596_v39 = vmul.f32 %v1383_v37, %v586_v15 }
 0x2c4   : > { %v604_v41 = vmul.f32 %v1110_v38, %v596_v39 }
 0x2c6   : > { %v612_v42 = vadd.f32 %v1111_v40, %v604_v41 }
 0x2c8   : > { %1384 = vtanh.f32 %v612_v42 }
 0x2d2   : > { %v1385_v43 = vpop.eup %1384 }
 0x2d3   : > { %v614_v44 = vpack.c.bf16 %v1385_v43, %v1385_v43 }
 0x2d5   : > { %1204 = vmatmul.mubr.bf16.vlgmr.msra.gmra.mrb[0].mxu1 %v614_v44 }
 0x2d6   : > { %1243 = vmatprep.mubr.msk.bf16.mxu1 %vm1630_vm0, %v1629_v0  ;;  %1228 = vmatpush3.bf16.msra.mxu1 %v1374_v47 }
 0x2d7   : > { %1229 = vmatprep.subr.bf16.mxu1 %v1629_v0 }
 0x2da   : > { %1230 = vmatpush3.bf16.msra.mxu1 %v1375_v48 }
 0x2db   : > { %1231 = vmatprep.subr.bf16.mxu1 %v1629_v0 }
 0x2de   : > { %1232 = vmatpush3.bf16.msra.mxu1 %v1376_v49 }
 0x2df   : > { %1233 = vmatprep.subr.bf16.mxu1 %v1629_v0 }
 0x2e2   : > { %1234 = vmatpush3.bf16.msra.mxu1 %v1377_v50 }
 0x2e3   : > { %1235 = vmatprep.subr.bf16.mxu1 %v1629_v0 }
 0x2e6   : > { %1236 = vmatpush3.bf16.msra.mxu1 %v1378_v51 }
 0x2e7   : > { %1237 = vmatprep.subr.bf16.mxu1 %v1629_v0 }
 0x2ea   : > { %1238 = vmatpush3.bf16.msra.mxu1 %v1379_v52 }
 0x2eb   : > { %1239 = vmatprep.subr.bf16.mxu1 %v1629_v0 }
 0x2ee   : > { %1240 = vmatpush3.bf16.msra.mxu1 %v1380_v61 }
 0x2ef   : > { %1241 = vmatprep.subr.bf16.mxu1 %v1629_v0  ;;  %v1130_v0 = vld [vmem:[%s2098_s10] ss:$0 sm:$0xff] }
 0x2f2   : > { %1242 = vmatpush3.bf16.msra.mxu1 %v1381_v62 }
 0x3a8   : > { %v720_v54 = vpop.f32.mrb[0].mxu1 }
 0x3a9   : > { %v721_v55 = vadd.f32 %v1112_v53, %v720_v54  ;;  %v1205_v56 = vpop.f32.mrb[1].mxu1 }
 0x3aa   : > { %v723_v57 = vpop.f32.mrb[2].mxu1 }
 0x3ab   : > { %v726_v58 = vmax.f32 %v721_v55, 0.0  ;;  %v1206_v59 = vpop.f32.mrb[3].mxu1 }
 0x3ad   : > { %v727_v60 = vpack.c.bf16 %v726_v58, %v726_v58 }
 0x3af   : > { %1224 = vmatmul.mubr.bf16.vlgmr.msra.gmra.mrb[4].mxu0 %v727_v60 }
 0x482   : > { %v833_v1 = vpop.f32.mrb[4].mxu0 }
 0x483   : > { %v834_v2 = vadd.f32 %v1121_v63, %v833_v1  ;;  %v1225_v3 = vpop.f32.mrb[5].mxu0 }
 0x484   : > { %v836_v4 = vpop.f32.mrb[6].mxu0 }
 0x485   : > { %v839_v5 = vmax.f32 %v834_v2, 0.0  ;;  %v1226_v6 = vpop.f32.mrb[7].mxu0 }
 0x487   : > { %v840_v7 = vpack.c.bf16 %v839_v5, %v839_v5 }
 0x489   : > { %1244 = vmatmul.mubr.bf16.vlgmr.msra.gmra.mrb[4].mxu1 %v840_v7 }
 0x55c   : > { %v946_v8 = vpop.f32.mrb[4].mxu1 }
 0x55d   : > { %v947_v9 = vadd.f32 %v1130_v0, %v946_v8  ;;  %v1245_v10 = vpop.f32.mrb[5].mxu1 }
 0x55e   : > { %v949_v11 = vpop.f32.mrb[6].mxu1 }
 0x55f   : > { %1386 = vtanh.f32 %v947_v9  ;;  %v1246_v12 = vpop.f32.mrb[7].mxu1 }
 0x569   : > { %v1387_v13 = vpop.eup %1386 }
 0x56a   : > { %953 = vst [vmem:[%s482_s8] sm:$0xff] %v1387_v13 }
 0x56b   : > { %1543 = shalt.err (!%p1540_p8)
}
 0x56c   : > { %s1544_s1 = scalar_lea.hbm %s2008_s23, 128  ;;  %s1548_s6 = scalar_lea.hbm %s2099_s11, 256 }
 0x56d   : > { %p1545_p3 = scmp.ne.s32.totalorder %s2008_s23, %s1544_s1  ;;  %p1549_p13 = scmp.lt.u32.totalorder %s2008_s23, %s2099_s11 }
 0x56e   : > { %p1550_p12 = scmp.lt.u32.totalorder %s1548_s6, %s1544_s1  ;;  %p1552_p2 = scmp.lt.u32.totalorder %s1544_s1, %s2008_s23 }
 0x56f   : > { %p1546_p11 = pnand %p1545_p3, %p2100_p9 }
 0x570   : > { %p1551_p4 = por %p1550_p12, %p1549_p13 }
 0x571   : > { %p1547_p6 = pneg %p1546_p11 }
 0x572   : > { %p1553_p10 = por %p1552_p2, %p1551_p4 }
 0x574   : > { %p1554_p1 = pnand %p1553_p10, %p1547_p6 }
 0x576   : > { %1557 = shalt.err (!%p1554_p1)
}
 0x577   : > { %1265 = dma.vmem_to_hbm [thread:$0]  (%p2100_p9), %s2010_s14, 128, %s2008_s23, %s955_s27  }
 0x578 PF: > { %s980_s12 = sand.u32 1, %s1600_s17   ;;  %p2101_p0 = scmp.ne.s32.totalorder %s2091_s29, 0 }
 0x579   : > { %p2102_p7 = scmp.ge.s32.totalorder %s1620_s22, 2  ;;  %s981_s13 = scalar_lea.sflag [#allocation5], %s980_s12 }
 0x57b   : > { %p1285_p5 = pnand %p2102_p7, %p2101_p0 }
 0x57d   : > { %1595 = dma.done.wait (!%p1285_p5), %s981_s13, 128  }
 0x57e   : > { %1597 = vsyncadd (!%p1285_p5), %s981_s13, 4294967168  ;;  %s29_s22 = sadd.s32 1, %s1620_s22   ;;  %s2103_s17 = smov %s1604_s18 }
 0x57f   : > { %p26_p8 = scmp.ge.s32.totalorder %s29_s22, 4   ;;  %s2104_s18 = smov %s1608_s19 }
 0x580   : > { %s2105_s19 = smov %s1880_s26  ;;  %s2106_s20 = smov %s1616_s21 }
 0x581   : > { %s2107_s21 = smov %s2109_s28  ;;  %28 = sbr.rel (!%p26_p8) target bundleno = 14 (0xe), region = 134 }
 0x588   :  { %986 = vsyncpa [#allocation4], 1 }
 0x589   :  { %988 = vsyncpa [#allocation4 + $0x1], 1 }
 0x58a   :  { %989 = vsyncpa [#allocation7], 1 }
 0x58b   :  { %990 = vsyncpa [#allocation10], 1 }
 0x58c   :  { %991 = vsyncpa [#allocation5], 1 }
 0x58d   :  { %993 = vsyncpa [#allocation5 + $0x1], 1 }

</bundles_post_ra>
